<compile_context>
chip_gen: v6e
topology: v6e:2x2x1
jax: 0.10.0
libtpu: 0.0.40
codegen_flags: <defaults>
</compile_context>

<pallas_src>
import jax
import jax.numpy as jnp
from jax.experimental import pallas as pl
from jax.experimental.pallas import tpu as pltpu

TEMPERATURE = 0.1
INV_T = 1.0 / TEMPERATURE                 # compile-time LSE stabilizer (logit bound)
INV_SQRT_T = 1.0 / (TEMPERATURE ** 0.5)   # folded into operands -> 1/T on every dot
ALPHA_WEIGHT = 0.75
LARGE_NUM = 1e9                           # only used by the reference formulation
NORM_EPS = 1e-12                          # matches torch.nn.functional.normalize eps


# ------------------------------------- Pallas kernel -----------------------------------------

def abstract_loss_kernel(v_ref, t1_ref, agg_ref, out_ref):
    bs, _ = v_ref.shape

    v = v_ref[...].astype(jnp.float32)      # (bs, d)
    t1 = t1_ref[...].astype(jnp.float32)    # (bs, d)
    agg = agg_ref[...].astype(jnp.float32)  # (bs, d) = mean(text_embd_2, axis=1)

    # L2-normalize in f32 (rsqrt -> EUP slot); fold 1/sqrt(T) into the operands so every
    # pairwise dot (and the row-wise diagonals) carries the 1/temperature scale for free.
    def _norm_scale(x):
        ss = jnp.sum(x * x, axis=-1, keepdims=True)
        return x * (INV_SQRT_T * jax.lax.rsqrt(jnp.maximum(ss, NORM_EPS * NORM_EPS)))

    vn = _norm_scale(v)
    t1n = _norm_scale(t1)
    aggn = _norm_scale(agg)

    # MXU operands in bf16 (3-6x MXU throughput vs f32 multi-pass), f32 accumulation.
    vm = vn.astype(jnp.bfloat16)
    tm = t1n.astype(jnp.bfloat16)
    am = aggn.astype(jnp.bfloat16)

    # f32 views of the *rounded* operands so the diagonal targets see the same rounding
    # as the MXU logits (keeps LSE - diag consistent under bf16 operand rounding).
    vf = vm.astype(jnp.float32)
    tf = tm.astype(jnp.float32)
    af = am.astype(jnp.float32)

    def _simT(a, b):   # a @ b.T, f32 accumulation (temperature already folded in)
        return jax.lax.dot_general(a, b, (((1,), (1,)), ((), ())),
                                   preferred_element_type=jnp.float32)

    # 4 distinct similarity matrices; transposed variants handled via axis-0 reductions.
    L_vt = _simT(vm, tm)          # (bs, bs)  = v·t1 / T
    L_vv = _simT(vm, vm)
    L_tt = _simT(tm, tm)
    L_va = _simT(vm, am)

    # Diagonal targets via row-wise dots of the rounded operands (no matrix extraction).
    mean_diag_vt = jnp.mean(jnp.sum(vf * tf, axis=-1, keepdims=True), keepdims=True)  # (1,1)
    mean_diag_va = jnp.mean(jnp.sum(vf * af, axis=-1, keepdims=True), keepdims=True)

    # Compile-time stabilizer: logits bounded by ±1/T after normalization.
    M = INV_T

    # exp matrices; the NT-Xent self-similarity mask is fused into the exp via where,
    # so no masked-logit copy and no f32 eye matrix are ever materialized.
    ii = jax.lax.broadcasted_iota(jnp.int32, (bs, bs), 0)
    jj = jax.lax.broadcasted_iota(jnp.int32, (bs, bs), 1)
    offdiag = ii != jj

    E_vt = jnp.exp(L_vt - M)                                   # shared by loss_1 & loss_2
    E_vv = jnp.where(offdiag, jnp.exp(L_vv - M), 0.0)
    E_tt = jnp.where(offdiag, jnp.exp(L_tt - M), 0.0)

    r_vt = jnp.sum(E_vt, axis=1, keepdims=True)   # (bs,1): row sums of L_vt
    c_vt = jnp.sum(E_vt, axis=0, keepdims=True)   # (1,bs): row sums of L_vt.T (no transpose)
    r_vv = jnp.sum(E_vv, axis=1, keepdims=True)
    c_tt = jnp.sum(E_tt, axis=0, keepdims=True)   # == row sums (E_tt symmetric)

    # loss_1: symmetric CLIP InfoNCE on (v, t1)
    loss_v = jnp.mean(jnp.log(r_vt), keepdims=True) + M - mean_diag_vt
    loss_t = jnp.mean(jnp.log(c_vt), keepdims=True) + M - mean_diag_vt
    loss_1 = 0.5 * (loss_v + loss_t)

    # loss_2: NT-Xent, reusing the same exp(L_vt - M) matrix and its row/col sums.
    loss_a = jnp.mean(jnp.log(r_vt + r_vv), keepdims=True) + M - mean_diag_vt
    loss_b = jnp.mean(jnp.log(c_vt + c_tt), keepdims=True) + M - mean_diag_vt
    loss_2 = ALPHA_WEIGHT * loss_a + (1.0 - ALPHA_WEIGHT) * loss_b

    # loss_3: symmetric CLIP InfoNCE on (v, mean(t2)); one exp matrix serves both sides.
    E_va = jnp.exp(L_va - M)
    loss_v3 = (jnp.mean(jnp.log(jnp.sum(E_va, axis=1, keepdims=True)), keepdims=True)
               + M - mean_diag_va)
    loss_t3 = (jnp.mean(jnp.log(jnp.sum(E_va, axis=0, keepdims=True)), keepdims=True)
               + M - mean_diag_va)
    loss_3 = 0.5 * (loss_v3 + loss_t3)

    out_ref[...] = (loss_1 + loss_2 + loss_3) * (1.0 / 3.0)


def abstract_loss(video_embd, text_embd_1, text_embd_2):
    # mean over candidates is a trivially fused, mem-bound XLA reduce; doing it here
    # avoids DMAing the n_candidate-x larger, sublane-padded (bs, n_cand, d) tensor
    # into VMEM (the kernel then only touches lane/sublane-dense (bs, d) tiles).
    agg = jnp.mean(text_embd_2.astype(jnp.float32), axis=1)

    bs, d = video_embd.shape
    # Explicit scoped-VMEM budget: inputs (double-buffered) + ~6 live (bs,bs) f32
    # matrices + margin, clamped to the v7x physical ceiling.
    vmem_bytes = int(8 * bs * d * 4 + 8 * bs * bs * 4 + (1 << 20))
    vmem_bytes = min(max(vmem_bytes, 4 << 20), 64 << 20)

    out = pl.pallas_call(
        abstract_loss_kernel,
        out_shape=jax.ShapeDtypeStruct((1, 1), jnp.float32),
        in_specs=[pl.BlockSpec(memory_space=pltpu.MemorySpace.VMEM)] * 3,
        out_specs=pl.BlockSpec(memory_space=pltpu.MemorySpace.VMEM),
        compiler_params=pltpu.CompilerParams(vmem_limit_bytes=vmem_bytes),
    )(video_embd, text_embd_1, agg)
    return out[0, 0]


# ------------------------- pure-JAX reference (original formulation) --------------------------

def _ref_normalize(x):
    n = jnp.sqrt(jnp.sum(x * x, axis=-1, keepdims=True))
    return x / jnp.maximum(n, NORM_EPS)


def abstract_loss_ref(v, t1, t2, operand_dtype=jnp.float32):
    """Reference loss.  operand_dtype=float32 reproduces the original (PyTorch, f32)
    formulation; operand_dtype=bfloat16 mirrors the kernel's MXU operand rounding."""
    agg = jnp.mean(t2.astype(jnp.float32), axis=1)
    vn = _ref_normalize(v.astype(jnp.float32)) * INV_SQRT_T
    tn = _ref_normalize(t1.astype(jnp.float32)) * INV_SQRT_T
    an = _ref_normalize(agg) * INV_SQRT_T
    vm, tm, am = (x.astype(operand_dtype) for x in (vn, tn, an))

    sim = lambda a, b: jnp.dot(a, b.T, preferred_element_type=jnp.float32)
    lab, laa, lbb, lva = sim(vm, tm), sim(vm, vm), sim(tm, tm), sim(vm, am)
    lba, lav = lab.T, lva.T

    bs = v.shape[0]
    eye = jnp.eye(bs, dtype=jnp.float32)
    d_ab, d_va = jnp.diag(lab), jnp.diag(lva)
    lse = lambda x: jax.nn.logsumexp(x, axis=-1)

    loss_1 = 0.5 * (jnp.mean(lse(lab) - d_ab) + jnp.mean(lse(lba) - d_ab))
    loss_a = jnp.mean(lse(jnp.concatenate([lab, laa - eye * LARGE_NUM], axis=1)) - d_ab)
    loss_b = jnp.mean(lse(jnp.concatenate([lba, lbb - eye * LARGE_NUM], axis=1)) - d_ab)
    loss_2 = ALPHA_WEIGHT * loss_a + (1.0 - ALPHA_WEIGHT) * loss_b
    loss_3 = 0.5 * (jnp.mean(lse(lva) - d_va) + jnp.mean(lse(lav) - d_va))
    return (loss_1 + loss_2 + loss_3) / 3.0


# ------------------------------------------ demo ---------------------------------------------

if __name__ == "__main__":
    bs, d, n_candidate = 8, 32, 4
    key = jax.random.PRNGKey(0)
    k1, k2, k3 = jax.random.split(key, 3)
    video_embd = jax.random.normal(k1, (bs, d), dtype=jnp.float32)
    text_embd_1 = jax.random.normal(k2, (bs, d), dtype=jnp.float32)
    text_embd_2 = jax.random.normal(k3, (bs, n_candidate, d), dtype=jnp.float32)

    loss = jax.block_until_ready(
        abstract_loss(video_embd, text_embd_1, text_embd_2))

    # Tight check against a reference that mirrors the kernel's bf16 MXU operand rounding.
    ref_bf16 = abstract_loss_ref(video_embd, text_embd_1, text_embd_2,
                                 operand_dtype=jnp.bfloat16)
    # Looser check against the pure-f32 original formulation (bf16 operand rounding
    # introduces a small systematic difference in the logits, bounded by ~1/T * 2^-8).
    ref_f32 = abstract_loss_ref(video_embd, text_embd_1, text_embd_2,
                                operand_dtype=jnp.float32)

    assert jnp.isfinite(loss)
    assert jnp.allclose(loss, ref_bf16, rtol=2e-3, atol=2e-3), (loss, ref_bf16)
    assert jnp.allclose(loss, ref_f32, rtol=2e-2, atol=2e-2), (loss, ref_f32)

    print("KERNEL_OK")
</pallas_src>

<mosaic_0001>
module attributes {stable_mosaic.version = 11 : i64} {
  func.func @abstract_loss_kernel(%arg0: memref<8x32xf32, #tpu.memory_space<vmem>>, %arg1: memref<8x32xf32, #tpu.memory_space<vmem>>, %arg2: memref<8x32xf32, #tpu.memory_space<vmem>>, %arg3: memref<1x1xf32, #tpu.memory_space<vmem>>) attributes {dimension_semantics = [], scalar_prefetch = 0 : i64, scratch_operands = 0 : i64, tpu.core_type = #tpu.core_type<tc>} {
    %c0 = arith.constant 0 : index
    %c0_0 = arith.constant 0 : index
    %0 = vector.load %arg0[%c0, %c0_0] : memref<8x32xf32, #tpu.memory_space<vmem>>, vector<8x32xf32>
    %c0_1 = arith.constant 0 : index
    %c0_2 = arith.constant 0 : index
    %1 = vector.load %arg1[%c0_1, %c0_2] : memref<8x32xf32, #tpu.memory_space<vmem>>, vector<8x32xf32>
    %c0_3 = arith.constant 0 : index
    %c0_4 = arith.constant 0 : index
    %2 = vector.load %arg2[%c0_3, %c0_4] : memref<8x32xf32, #tpu.memory_space<vmem>>, vector<8x32xf32>
    %3 = arith.mulf %0, %0 : vector<8x32xf32>
    %cst = arith.constant dense<0.000000e+00> : vector<8xf32>
    %4 = vector.multi_reduction <add>, %3, %cst [1] : vector<8x32xf32> to vector<8xf32>
    %5 = vector.shape_cast %4 : vector<8xf32> to vector<8x1xf32>
    %cst_5 = arith.constant 1.000000e-24 : f32
    %6 = vector.broadcast %cst_5 : f32 to vector<8x1xf32>
    %7 = arith.maximumf %5, %6 : vector<8x1xf32>
    %8 = math.rsqrt %7 : vector<8x1xf32>
    %cst_6 = arith.constant 3.1622777 : f32
    %9 = vector.broadcast %cst_6 : f32 to vector<8x1xf32>
    %10 = arith.mulf %9, %8 : vector<8x1xf32>
    %11 = vector.broadcast %10 : vector<8x1xf32> to vector<8x32xf32>
    %12 = arith.mulf %0, %11 : vector<8x32xf32>
    %13 = arith.mulf %1, %1 : vector<8x32xf32>
    %cst_7 = arith.constant dense<0.000000e+00> : vector<8xf32>
    %14 = vector.multi_reduction <add>, %13, %cst_7 [1] : vector<8x32xf32> to vector<8xf32>
    %15 = vector.shape_cast %14 : vector<8xf32> to vector<8x1xf32>
    %cst_8 = arith.constant 1.000000e-24 : f32
    %16 = vector.broadcast %cst_8 : f32 to vector<8x1xf32>
    %17 = arith.maximumf %15, %16 : vector<8x1xf32>
    %18 = math.rsqrt %17 : vector<8x1xf32>
    %cst_9 = arith.constant 3.1622777 : f32
    %19 = vector.broadcast %cst_9 : f32 to vector<8x1xf32>
    %20 = arith.mulf %19, %18 : vector<8x1xf32>
    %21 = vector.broadcast %20 : vector<8x1xf32> to vector<8x32xf32>
    %22 = arith.mulf %1, %21 : vector<8x32xf32>
    %23 = arith.mulf %2, %2 : vector<8x32xf32>
    %cst_10 = arith.constant dense<0.000000e+00> : vector<8xf32>
    %24 = vector.multi_reduction <add>, %23, %cst_10 [1] : vector<8x32xf32> to vector<8xf32>
    %25 = vector.shape_cast %24 : vector<8xf32> to vector<8x1xf32>
    %cst_11 = arith.constant 1.000000e-24 : f32
    %26 = vector.broadcast %cst_11 : f32 to vector<8x1xf32>
    %27 = arith.maximumf %25, %26 : vector<8x1xf32>
    %28 = math.rsqrt %27 : vector<8x1xf32>
    %cst_12 = arith.constant 3.1622777 : f32
    %29 = vector.broadcast %cst_12 : f32 to vector<8x1xf32>
    %30 = arith.mulf %29, %28 : vector<8x1xf32>
    %31 = vector.broadcast %30 : vector<8x1xf32> to vector<8x32xf32>
    %32 = arith.mulf %2, %31 : vector<8x32xf32>
    %33 = arith.truncf %12 : vector<8x32xf32> to vector<8x32xbf16>
    %34 = arith.truncf %22 : vector<8x32xf32> to vector<8x32xbf16>
    %35 = arith.truncf %32 : vector<8x32xf32> to vector<8x32xbf16>
    %36 = arith.extf %33 : vector<8x32xbf16> to vector<8x32xf32>
    %37 = arith.extf %34 : vector<8x32xbf16> to vector<8x32xf32>
    %38 = arith.extf %35 : vector<8x32xbf16> to vector<8x32xf32>
    %cst_13 = arith.constant dense<0.000000e+00> : vector<8x8xf32>
    %39 = tpu.matmul %33, %34, %cst_13 {dimension_numbers = #tpu.dot_dimension_numbers<[1], [1], [0], [0], [0, 0, 1, 0], [], []>} : vector<8x32xbf16>, vector<8x32xbf16>, vector<8x8xf32> -> vector<8x8xf32>
    %cst_14 = arith.constant dense<0.000000e+00> : vector<8x8xf32>
    %40 = tpu.matmul %33, %33, %cst_14 {dimension_numbers = #tpu.dot_dimension_numbers<[1], [1], [0], [0], [0, 0, 1, 0], [], []>} : vector<8x32xbf16>, vector<8x32xbf16>, vector<8x8xf32> -> vector<8x8xf32>
    %cst_15 = arith.constant dense<0.000000e+00> : vector<8x8xf32>
    %41 = tpu.matmul %34, %34, %cst_15 {dimension_numbers = #tpu.dot_dimension_numbers<[1], [1], [0], [0], [0, 0, 1, 0], [], []>} : vector<8x32xbf16>, vector<8x32xbf16>, vector<8x8xf32> -> vector<8x8xf32>
    %cst_16 = arith.constant dense<0.000000e+00> : vector<8x8xf32>
    %42 = tpu.matmul %33, %35, %cst_16 {dimension_numbers = #tpu.dot_dimension_numbers<[1], [1], [0], [0], [0, 0, 1, 0], [], []>} : vector<8x32xbf16>, vector<8x32xbf16>, vector<8x8xf32> -> vector<8x8xf32>
    %43 = arith.mulf %36, %37 : vector<8x32xf32>
    %cst_17 = arith.constant dense<0.000000e+00> : vector<8xf32>
    %44 = vector.multi_reduction <add>, %43, %cst_17 [1] : vector<8x32xf32> to vector<8xf32>
    %45 = vector.shape_cast %44 : vector<8xf32> to vector<8x1xf32>
    %46 = vector.shape_cast %45 : vector<8x1xf32> to vector<1x8x1xf32>
    %cst_18 = arith.constant dense<0.000000e+00> : vector<1xf32>
    %47 = vector.multi_reduction <add>, %46, %cst_18 [1, 2] : vector<1x8x1xf32> to vector<1xf32>
    %48 = vector.shape_cast %47 : vector<1xf32> to vector<1x1x1xf32>
    %49 = vector.extract %48[0, 0, 0] : f32 from vector<1x1x1xf32>
    %50 = vector.broadcast %49 : f32 to vector<1x1xf32>
    %cst_19 = arith.constant 8.000000e+00 : f32
    %51 = vector.broadcast %cst_19 : f32 to vector<1x1xf32>
    %52 = arith.divf %50, %51 : vector<1x1xf32>
    %53 = arith.mulf %36, %38 : vector<8x32xf32>
    %cst_20 = arith.constant dense<0.000000e+00> : vector<8xf32>
    %54 = vector.multi_reduction <add>, %53, %cst_20 [1] : vector<8x32xf32> to vector<8xf32>
    %55 = vector.shape_cast %54 : vector<8xf32> to vector<8x1xf32>
    %56 = vector.shape_cast %55 : vector<8x1xf32> to vector<1x8x1xf32>
    %cst_21 = arith.constant dense<0.000000e+00> : vector<1xf32>
    %57 = vector.multi_reduction <add>, %56, %cst_21 [1, 2] : vector<1x8x1xf32> to vector<1xf32>
    %58 = vector.shape_cast %57 : vector<1xf32> to vector<1x1x1xf32>
    %59 = vector.extract %58[0, 0, 0] : f32 from vector<1x1x1xf32>
    %60 = vector.broadcast %59 : f32 to vector<1x1xf32>
    %cst_22 = arith.constant 8.000000e+00 : f32
    %61 = vector.broadcast %cst_22 : f32 to vector<1x1xf32>
    %62 = arith.divf %60, %61 : vector<1x1xf32>
    %63 = tpu.iota {dimensions = array<i32: 0>} : vector<8x8xi32>
    %64 = tpu.iota {dimensions = array<i32: 1>} : vector<8x8xi32>
    %65 = arith.cmpi ne, %63, %64 : vector<8x8xi32>
    %cst_23 = arith.constant 1.000000e+01 : f32
    %66 = vector.broadcast %cst_23 : f32 to vector<8x8xf32>
    %67 = arith.subf %39, %66 : vector<8x8xf32>
    %68 = math.exp %67 : vector<8x8xf32>
    %cst_24 = arith.constant 1.000000e+01 : f32
    %69 = vector.broadcast %cst_24 : f32 to vector<8x8xf32>
    %70 = arith.subf %40, %69 : vector<8x8xf32>
    %71 = math.exp %70 : vector<8x8xf32>
    %cst_25 = arith.constant 0.000000e+00 : f32
    %72 = vector.broadcast %cst_25 : f32 to vector<8x8xf32>
    %73 = arith.select %65, %71, %72 : vector<8x8xi1>, vector<8x8xf32>
    %cst_26 = arith.constant 1.000000e+01 : f32
    %74 = vector.broadcast %cst_26 : f32 to vector<8x8xf32>
    %75 = arith.subf %41, %74 : vector<8x8xf32>
    %76 = math.exp %75 : vector<8x8xf32>
    %cst_27 = arith.constant 0.000000e+00 : f32
    %77 = vector.broadcast %cst_27 : f32 to vector<8x8xf32>
    %78 = arith.select %65, %76, %77 : vector<8x8xi1>, vector<8x8xf32>
    %cst_28 = arith.constant dense<0.000000e+00> : vector<8xf32>
    %79 = vector.multi_reduction <add>, %68, %cst_28 [1] : vector<8x8xf32> to vector<8xf32>
    %80 = vector.shape_cast %79 : vector<8xf32> to vector<8x1xf32>
    %cst_29 = arith.constant dense<0.000000e+00> : vector<8xf32>
    %81 = vector.multi_reduction <add>, %68, %cst_29 [0] : vector<8x8xf32> to vector<8xf32>
    %82 = vector.shape_cast %81 : vector<8xf32> to vector<1x8xf32>
    %cst_30 = arith.constant dense<0.000000e+00> : vector<8xf32>
    %83 = vector.multi_reduction <add>, %73, %cst_30 [1] : vector<8x8xf32> to vector<8xf32>
    %84 = vector.shape_cast %83 : vector<8xf32> to vector<8x1xf32>
    %cst_31 = arith.constant dense<0.000000e+00> : vector<8xf32>
    %85 = vector.multi_reduction <add>, %78, %cst_31 [0] : vector<8x8xf32> to vector<8xf32>
    %86 = vector.shape_cast %85 : vector<8xf32> to vector<1x8xf32>
    %87 = math.log %80 : vector<8x1xf32>
    %88 = vector.shape_cast %87 : vector<8x1xf32> to vector<1x8x1xf32>
    %cst_32 = arith.constant dense<0.000000e+00> : vector<1xf32>
    %89 = vector.multi_reduction <add>, %88, %cst_32 [1, 2] : vector<1x8x1xf32> to vector<1xf32>
    %90 = vector.shape_cast %89 : vector<1xf32> to vector<1x1x1xf32>
    %91 = vector.extract %90[0, 0, 0] : f32 from vector<1x1x1xf32>
    %92 = vector.broadcast %91 : f32 to vector<1x1xf32>
    %cst_33 = arith.constant 8.000000e+00 : f32
    %93 = vector.broadcast %cst_33 : f32 to vector<1x1xf32>
    %94 = arith.divf %92, %93 : vector<1x1xf32>
    %cst_34 = arith.constant 1.000000e+01 : f32
    %95 = vector.broadcast %cst_34 : f32 to vector<1x1xf32>
    %96 = arith.addf %94, %95 : vector<1x1xf32>
    %97 = arith.subf %96, %52 : vector<1x1xf32>
    %98 = math.log %82 : vector<1x8xf32>
    %99 = vector.shape_cast %98 : vector<1x8xf32> to vector<1x1x8xf32>
    %cst_35 = arith.constant dense<0.000000e+00> : vector<1xf32>
    %100 = vector.multi_reduction <add>, %99, %cst_35 [1, 2] : vector<1x1x8xf32> to vector<1xf32>
    %101 = vector.shape_cast %100 : vector<1xf32> to vector<1x1x1xf32>
    %102 = vector.extract %101[0, 0, 0] : f32 from vector<1x1x1xf32>
    %103 = vector.broadcast %102 : f32 to vector<1x1xf32>
    %cst_36 = arith.constant 8.000000e+00 : f32
    %104 = vector.broadcast %cst_36 : f32 to vector<1x1xf32>
    %105 = arith.divf %103, %104 : vector<1x1xf32>
    %cst_37 = arith.constant 1.000000e+01 : f32
    %106 = vector.broadcast %cst_37 : f32 to vector<1x1xf32>
    %107 = arith.addf %105, %106 : vector<1x1xf32>
    %108 = arith.subf %107, %52 : vector<1x1xf32>
    %109 = arith.addf %97, %108 : vector<1x1xf32>
    %cst_38 = arith.constant 5.000000e-01 : f32
    %110 = vector.broadcast %cst_38 : f32 to vector<1x1xf32>
    %111 = arith.mulf %110, %109 : vector<1x1xf32>
    %112 = arith.addf %80, %84 : vector<8x1xf32>
    %113 = math.log %112 : vector<8x1xf32>
    %114 = vector.shape_cast %113 : vector<8x1xf32> to vector<1x8x1xf32>
    %cst_39 = arith.constant dense<0.000000e+00> : vector<1xf32>
    %115 = vector.multi_reduction <add>, %114, %cst_39 [1, 2] : vector<1x8x1xf32> to vector<1xf32>
    %116 = vector.shape_cast %115 : vector<1xf32> to vector<1x1x1xf32>
    %117 = vector.extract %116[0, 0, 0] : f32 from vector<1x1x1xf32>
    %118 = vector.broadcast %117 : f32 to vector<1x1xf32>
    %cst_40 = arith.constant 8.000000e+00 : f32
    %119 = vector.broadcast %cst_40 : f32 to vector<1x1xf32>
    %120 = arith.divf %118, %119 : vector<1x1xf32>
    %cst_41 = arith.constant 1.000000e+01 : f32
    %121 = vector.broadcast %cst_41 : f32 to vector<1x1xf32>
    %122 = arith.addf %120, %121 : vector<1x1xf32>
    %123 = arith.subf %122, %52 : vector<1x1xf32>
    %124 = arith.addf %82, %86 : vector<1x8xf32>
    %125 = math.log %124 : vector<1x8xf32>
    %126 = vector.shape_cast %125 : vector<1x8xf32> to vector<1x1x8xf32>
    %cst_42 = arith.constant dense<0.000000e+00> : vector<1xf32>
    %127 = vector.multi_reduction <add>, %126, %cst_42 [1, 2] : vector<1x1x8xf32> to vector<1xf32>
    %128 = vector.shape_cast %127 : vector<1xf32> to vector<1x1x1xf32>
    %129 = vector.extract %128[0, 0, 0] : f32 from vector<1x1x1xf32>
    %130 = vector.broadcast %129 : f32 to vector<1x1xf32>
    %cst_43 = arith.constant 8.000000e+00 : f32
    %131 = vector.broadcast %cst_43 : f32 to vector<1x1xf32>
    %132 = arith.divf %130, %131 : vector<1x1xf32>
    %cst_44 = arith.constant 1.000000e+01 : f32
    %133 = vector.broadcast %cst_44 : f32 to vector<1x1xf32>
    %134 = arith.addf %132, %133 : vector<1x1xf32>
    %135 = arith.subf %134, %52 : vector<1x1xf32>
    %cst_45 = arith.constant 7.500000e-01 : f32
    %136 = vector.broadcast %cst_45 : f32 to vector<1x1xf32>
    %137 = arith.mulf %136, %123 : vector<1x1xf32>
    %cst_46 = arith.constant 2.500000e-01 : f32
    %138 = vector.broadcast %cst_46 : f32 to vector<1x1xf32>
    %139 = arith.mulf %138, %135 : vector<1x1xf32>
    %140 = arith.addf %137, %139 : vector<1x1xf32>
    %cst_47 = arith.constant 1.000000e+01 : f32
    %141 = vector.broadcast %cst_47 : f32 to vector<8x8xf32>
    %142 = arith.subf %42, %141 : vector<8x8xf32>
    %143 = math.exp %142 : vector<8x8xf32>
    %cst_48 = arith.constant dense<0.000000e+00> : vector<8xf32>
    %144 = vector.multi_reduction <add>, %143, %cst_48 [1] : vector<8x8xf32> to vector<8xf32>
    %145 = vector.shape_cast %144 : vector<8xf32> to vector<8x1xf32>
    %146 = math.log %145 : vector<8x1xf32>
    %147 = vector.shape_cast %146 : vector<8x1xf32> to vector<1x8x1xf32>
    %cst_49 = arith.constant dense<0.000000e+00> : vector<1xf32>
    %148 = vector.multi_reduction <add>, %147, %cst_49 [1, 2] : vector<1x8x1xf32> to vector<1xf32>
    %149 = vector.shape_cast %148 : vector<1xf32> to vector<1x1x1xf32>
    %150 = vector.extract %149[0, 0, 0] : f32 from vector<1x1x1xf32>
    %151 = vector.broadcast %150 : f32 to vector<1x1xf32>
    %cst_50 = arith.constant 8.000000e+00 : f32
    %152 = vector.broadcast %cst_50 : f32 to vector<1x1xf32>
    %153 = arith.divf %151, %152 : vector<1x1xf32>
    %cst_51 = arith.constant 1.000000e+01 : f32
    %154 = vector.broadcast %cst_51 : f32 to vector<1x1xf32>
    %155 = arith.addf %153, %154 : vector<1x1xf32>
    %156 = arith.subf %155, %62 : vector<1x1xf32>
    %cst_52 = arith.constant dense<0.000000e+00> : vector<8xf32>
    %157 = vector.multi_reduction <add>, %143, %cst_52 [0] : vector<8x8xf32> to vector<8xf32>
    %158 = vector.shape_cast %157 : vector<8xf32> to vector<1x8xf32>
    %159 = math.log %158 : vector<1x8xf32>
    %160 = vector.shape_cast %159 : vector<1x8xf32> to vector<1x1x8xf32>
    %cst_53 = arith.constant dense<0.000000e+00> : vector<1xf32>
    %161 = vector.multi_reduction <add>, %160, %cst_53 [1, 2] : vector<1x1x8xf32> to vector<1xf32>
    %162 = vector.shape_cast %161 : vector<1xf32> to vector<1x1x1xf32>
    %163 = vector.extract %162[0, 0, 0] : f32 from vector<1x1x1xf32>
    %164 = vector.broadcast %163 : f32 to vector<1x1xf32>
    %cst_54 = arith.constant 8.000000e+00 : f32
    %165 = vector.broadcast %cst_54 : f32 to vector<1x1xf32>
    %166 = arith.divf %164, %165 : vector<1x1xf32>
    %cst_55 = arith.constant 1.000000e+01 : f32
    %167 = vector.broadcast %cst_55 : f32 to vector<1x1xf32>
    %168 = arith.addf %166, %167 : vector<1x1xf32>
    %169 = arith.subf %168, %62 : vector<1x1xf32>
    %170 = arith.addf %156, %169 : vector<1x1xf32>
    %cst_56 = arith.constant 5.000000e-01 : f32
    %171 = vector.broadcast %cst_56 : f32 to vector<1x1xf32>
    %172 = arith.mulf %171, %170 : vector<1x1xf32>
    %173 = arith.addf %111, %140 : vector<1x1xf32>
    %174 = arith.addf %173, %172 : vector<1x1xf32>
    %cst_57 = arith.constant 0.333333343 : f32
    %175 = vector.broadcast %cst_57 : f32 to vector<1x1xf32>
    %176 = arith.mulf %174, %175 : vector<1x1xf32>
    %c0_58 = arith.constant 0 : index
    %c0_59 = arith.constant 0 : index
    %177 = vector.load %arg3[%c0_58, %c0_59] : memref<1x1xf32, #tpu.memory_space<vmem>>, vector<1x1xf32>
    tpu.vector_store %arg3[%c0_58, %c0_59], %176 {strides = array<i32>} : memref<1x1xf32, #tpu.memory_space<vmem>>, vector<1x1xf32>,
    return
  }
}

</mosaic_0001>

<bundles_post_ra>
// kernel: tpu_custom_call.1
= control target key start
LH: loop header
LB: loop body
LE: loop exit
PB: predicated region body
PF: predicated region fallthrough
CT: control target
= control target key end

     0   :  { %8 = vsyncpa [#allocation3], 0  ;;  %s708_s0 = inlined_call_operand.hbm [shape: f32[8,32], index: 0, kind: input, shape index: {}]   ;;  %s709_s1 = inlined_call_operand.hbm [shape: f32[8,32], index: 1, kind: input, shape index: {}]   ;;  %s710_s2 = inlined_call_operand.hbm [shape: f32[8,32], index: 2, kind: input, shape index: {}]   ;;  %s711_s3 = inlined_call_operand.hbm [shape: f32[1,1], index: 3, kind: output, shape index: {}]  }
   0x1   :  { %9 = vsyncpa [#allocation6], 0 }
   0x2   :  { %10 = vsyncpa [#allocation4], 0  ;;  %s637_s12 = smov [#allocation5]   ;;  %s638_s14 = smov [#allocation2]  }
   0x3   :  { %s27_s13 = sshll.u32 %s637_s12, 4  ;;  %s17_s15 = sshll.u32 %s638_s14, 4  ;;  %s28_s13 = int_to_ptr.vmem [resolvable:$true] %s27_s13  ;;  %s18_s15 = int_to_ptr.vmem [resolvable:$true] %s17_s15 }
   0x4   :  { %s559_s16 = scalar_lea.vmem %s28_s13, 128  ;;  %p564_p1 = scmp.lt.s32.totalorder %s28_s13, %s28_s13 }
   0x5   :  { %p560_p0 = scmp.ne.s32.totalorder %s28_s13, %s559_s16  ;;  %p565_p2 = scmp.lt.s32.totalorder %s559_s16, %s559_s16 }
   0x7   :  { %p566_p3 = por %p565_p2, %p564_p1 }
   0x9   :  { %p567_p4 = pnand %p566_p3, %p560_p0 }
   0xb   :  { %570 = shalt.err (!%p567_p4)
}
   0xc   :  { %30 = dma.hbm_to_vmem [thread:$0]  %s709_s1, 128, %s28_s13, [#allocation6]  }
   0xd   :  { %s579_s19 = scalar_lea.vmem %s18_s15, 128  ;;  %p584_p6 = scmp.lt.s32.totalorder %s18_s15, %s18_s15 }
   0xe   :  { %p580_p5 = scmp.ne.s32.totalorder %s18_s15, %s579_s19  ;;  %p585_p7 = scmp.lt.s32.totalorder %s579_s19, %s579_s19 }
  0x10   :  { %p586_p8 = por %p585_p7, %p584_p6 }
  0x12   :  { %p587_p9 = pnand %p586_p8, %p580_p5 }
  0x14   :  { %590 = shalt.err (!%p587_p9)
}
  0x15   :  { %20 = dma.hbm_to_vmem [thread:$0]  %s708_s0, 128, %s18_s15, [#allocation3]  }
  0x16   :  { %s639_s22 = smov [#allocation7]  }
  0x17   :  { %s37_s23 = sshll.u32 %s639_s22, 4  ;;  %s38_s23 = int_to_ptr.vmem [resolvable:$true] %s37_s23 }
  0x18   :  { %s599_s24 = scalar_lea.vmem %s38_s23, 128  ;;  %p604_p11 = scmp.lt.s32.totalorder %s38_s23, %s38_s23 }
  0x19   :  { %p600_p10 = scmp.ne.s32.totalorder %s38_s23, %s599_s24  ;;  %p605_p12 = scmp.lt.s32.totalorder %s599_s24, %s599_s24 }
  0x1b   :  { %p606_p13 = por %p605_p12, %p604_p11 }
  0x1d   :  { %p607_p0 = pnand %p606_p13, %p600_p10 }
  0x1f   :  { %610 = shalt.err (!%p607_p0)
}
  0x20   :  { %40 = dma.hbm_to_vmem [thread:$0]  %s710_s2, 128, %s38_s23, [#allocation6]  }
  0x21   :  { %631 = dma.done.wait [#allocation3], 128  }
  0x22   :  { %632 = vsyncadd [#allocation3], 4294967168 }
  0x23   :  { %633 = dma.done.wait [#allocation6], 256  }
  0x24   :  { %634 = vsyncadd [#allocation6], 4294967040  ;;  %v53_v0 = vld [vmem:[#allocation7] sm:$0xff]  ;;  %vm55_vm0 = vcmask 261120   ;;  %v51_v1 = vld [vmem:[#allocation2] sm:$0xff]  ;;  %v640_v9 = vmov 0.0   ;;  %v288_v48 = vlaneseq }
  0x25   :  { %v52_v2 = vld [vmem:[#allocation5] sm:$0xff]  ;;  %v71_v3 = vmul.f32 %v53_v0, %v53_v0  ;;  %v54_v4 = vmul.f32 %v51_v1, %v51_v1  ;;  %485 = vmatprep.subr.bf16.mxu1 %v640_v9  ;;  %479 = vmatprep.subr.bf16.mxu0 %v640_v9  ;;  %vm641_vm1 = vmmov 0   ;;  %vm304_vm3 = vcmask 64512   ;;  %s642_s5 = smov [#allocation8]  }
  0x26   :  { %v63_v5 = vmul.f32 %v52_v2, %v52_v2  ;;  %487 = vmatprep.mubr.msk.bf16.mxu1 %vm641_vm1, %v640_v9  ;;  %481 = vmatprep.mubr.msk.bf16.mxu0 %vm641_vm1, %v640_v9  ;;  %v289_v56 = vshrl.u32 %v288_v48, 7  ;;  %v291_v57 = vand.u32 127, %v288_v48  ;;  %vm258_vm4 = vcmask 7168   ;;  %s453_s6 = sshll.u32 %s642_s5, 4  ;;  %s454_s6 = int_to_ptr.vmem [resolvable:$true] %s453_s6 }
  0x27   :  { %v72_v6 = vsel %vm55_vm0, %v71_v3, 0.0  ;;  %v56_v7 = vsel %vm55_vm0, %v54_v4, 0.0  ;;  %vm342_vm5 = vcmask 57344   ;;  %vm445_vm6 = vcmask 0   ;;  %s611_s7 = scalar_lea.vmem %s454_s6, 16  ;;  %s615_s8 = scalar_lea.vmem %s454_s6, 32 }
  0x28   :  { %73 = vadd.xlane.f32.xlu1 %v72_v6  ;;  %57 = vadd.xlane.f32.xlu0 %v56_v7  ;;  %v64_v8 = vsel %vm55_vm0, %v63_v5, 0.0  ;;  %vm292_vm2 = vcmp.ne.s32.totalorder %v289_v56, %v291_v57  ;;  %p612_p1 = scmp.ne.s32.totalorder %s454_s6, %s611_s7  ;;  %p616_p2 = scmp.lt.s32.totalorder %s454_s6, %s454_s6 }
  0x29   :  { %p617_p3 = scmp.lt.s32.totalorder %s615_s8, %s611_s7 }
  0x2b   :  { %p618_p4 = por %p617_p3, %p616_p2 }
  0x2c   :  { %65 = vadd.xlane.f32.xlu0 %v64_v8 }
  0x2d   :  { %p619_p5 = pnand %p618_p4, %p612_p1 }
  0xb1   :  { %v74_v10 = vpop.xlane.xlu1 %73  ;;  %v58_v11 = vpop.xlane.xlu0 %57 }
  0xb2   :  { %v75_v12 = vmax.f32 %v74_v10, 1e-24  ;;  %v59_v13 = vmax.f32 %v58_v11, 1e-24 }
  0xb4   :  { %525 = vrsqrt.f32 %v75_v12 }
  0xb5   :  { %527 = vrsqrt.f32 %v59_v13  ;;  %v66_v14 = vpop.xlane.xlu0 %65 }
  0xb6   :  { %v67_v15 = vmax.f32 %v66_v14, 1e-24 }
  0xb8   :  { %529 = vrsqrt.f32 %v67_v15 }
  0xc1   :  { %v526_v16 = vpop.eup %525 }
  0xc2   :  { %v528_v17 = vpop.eup %527  ;;  %v77_v18 = vmul.f32 3.1622777, %v526_v16 }
  0xc3   :  { %v61_v19 = vmul.f32 3.1622777, %v528_v17 }
  0xc4   :  { %v78_v20 = vmul.f32 %v77_v18, %v53_v0 }
  0xc5   :  { %v530_v21 = vpop.eup %529  ;;  %v62_v22 = vmul.f32 %v61_v19, %v51_v1 }
  0xc6   :  { %v69_v23 = vmul.f32 3.1622777, %v530_v21  ;;  %v81_v24 = vpack.c.bf16 %v78_v20, %v78_v20 }
  0xc7   :  { %v79_v25 = vpack.c.bf16 %v62_v22, %v62_v22 }
  0xc8   :  { %v70_v26 = vmul.f32 %v69_v23, %v52_v2  ;;  %v84_v27 = vunpack.c.l.bf16 %v81_v24  ;;  %v212_v35 = vsel %vm55_vm0, %v81_v24, 0 }
  0xc9   :  { %v86_v28 = vsel %vm55_vm0, %v79_v25, 0  ;;  %v82_v29 = vunpack.c.l.bf16 %v79_v25 }
  0xca   :  { %486 = vmatpush3.bf16.xpose.msra.mxu1 %v86_v28  ;;  %v80_v30 = vpack.c.bf16 %v70_v26, %v70_v26 }
  0xcb   :  { %497 = vmatprep.subr.bf16.mxu1 %v640_v9  ;;  %v678_v31 = vmul.f32 %v84_v27, %v82_v29 }
  0xcc   :  { %v89_v32 = vsel %vm55_vm0, %v80_v30, 0  ;;  %v83_v33 = vunpack.c.l.bf16 %v80_v30 }
  0xcd   :  { %480 = vmatpush3.bf16.xpose.msra.mxu0 %v89_v32  ;;  %v273_v13 = vsel %vm55_vm0, %v678_v31, 0.0 }
  0xce   :  { %491 = vmatprep.subr.bf16.mxu0 %v640_v9  ;;  %v254_v34 = vmul.f32 %v83_v33, %v82_v29 }
  0xd0   :  { %v255_v5 = vsel %vm55_vm0, %v254_v34, 0.0 }
  0xd1   :  { %488 = vmatmul.mubr.msk.bf16.vlgmr.msra.gmra.mxu1 %vm55_vm0, %v79_v25 }
  0xd2   :  { %498 = vmatpush3.bf16.xpose.msra.mxu1 %v212_v35  ;;  %499 = vmatprep.mubr.msk.bf16.mxu1 %vm641_vm1, %v640_v9 }
  0xd4   :  { %482 = vmatmul.mubr.msk.bf16.vlgmr.msra.gmra.mxu0 %vm55_vm0, %v79_v25 }
  0xd5   :  { %492 = vmatpush3.bf16.xpose.msra.mxu0 %v89_v32  ;;  %493 = vmatprep.mubr.msk.bf16.mxu0 %vm641_vm1, %v640_v9 }
  0xd9   :  { %500 = vmatmul.mubr.msk.bf16.vlgmr.msra.gmra.mxu1 %vm55_vm0, %v79_v25 }
  0xdc   :  { %494 = vmatmul.mubr.msk.bf16.vlgmr.msra.gmra.mxu0 %vm55_vm0, %v80_v30 }
 0x191   :  { %v165_v36 = vpop.f32.mrf.mxu1 }
 0x192   :  { %v468_v37 = vadd.f32 -10.0, %v165_v36 }
 0x193   :  { %v489_v38 = vpop.f32.mrf.mxu1 }
 0x194   :  { %v297_v39 = vmul.f32 1.442695, %v468_v37  ;;  %v125_v40 = vpop.f32.mrf.mxu0 }
 0x195   :  { %v467_v41 = vadd.f32 -10.0, %v125_v40  ;;  %v168_v42 = vpop.f32.mrf.mxu1 }
 0x196   :  { %531 = vpow2.f32 %v297_v39  ;;  %v483_v43 = vpop.f32.mrf.mxu0 }
 0x197   :  { %v294_v44 = vmul.f32 1.442695, %v467_v41  ;;  %v490_v45 = vpop.f32.mrf.mxu1 }
 0x198   :  { %v128_v46 = vpop.f32.mrf.mxu0 }
 0x199   :  { %533 = vpow2.f32 %v294_v44  ;;  %v248_v47 = vpop.f32.mrf.mxu1 }
 0x19a   :  { %v470_v49 = vadd.f32 -10.0, %v248_v47  ;;  %v484_v50 = vpop.f32.mrf.mxu0 }
 0x19b   :  { %v501_v51 = vpop.f32.mrf.mxu1 }
 0x19c   :  { %v397_v52 = vmul.f32 1.442695, %v470_v49  ;;  %v205_v53 = vpop.f32.mrf.mxu0 }
 0x19d   :  { %v469_v54 = vadd.f32 -10.0, %v205_v53  ;;  %v251_v55 = vpop.f32.mrf.mxu1 }
 0x19e   :  { %535 = vpow2.f32 %v397_v52  ;;  %v495_v58 = vpop.f32.mrf.mxu0 }
 0x19f   :  { %v301_v59 = vmul.f32 1.442695, %v469_v54  ;;  %v502_v60 = vpop.f32.mrf.mxu1 }
 0x1a0   :  { %v208_v61 = vpop.f32.mrf.mxu0 }
 0x1a1   :  { %537 = vpow2.f32 %v301_v59 }
 0x1a2   :  { %v496_v62 = vpop.f32.mrf.mxu0 }
 0x1a3   :  { %v532_v63 = vpop.eup %531 }
 0x1a4   :  { %v299_v0 = vsel %vm292_vm2, %v532_v63, 0.0 }
 0x1a5   :  { %v314_v1 = vsel %vm304_vm3, %v299_v0, 0.0 }
 0x1a6   :  { %v534_v2 = vpop.eup %533  ;;  %315 = vadd.xlane.f32.xlu0 %v314_v1 }
 0x1a7   :  { %v305_v3 = vsel %vm304_vm3, %v534_v2, 0.0 }
 0x1a8   :  { %306 = vadd.xlane.f32.xlu1 %v305_v3  ;;  %v308_v4 = vrot.slane %v305_v3, 4 }
 0x1aa   :  { %256 = vadd.xlane.f32.xlu0 %v255_v5  ;;  %v309_v7 = vadd.f32 %v308_v4, %v305_v3 }
 0x1ab   :  { %v536_v6 = vpop.eup %535 }
 0x1ac   :  { %v399_v8 = vsel %vm304_vm3, %v536_v6, 0.0  ;;  %v310_v11 = vrot.slane %v309_v7, 2 }
 0x1ad   :  { %400 = vadd.xlane.f32.xlu1 %v399_v8  ;;  %v418_v24 = vrot.slane %v399_v8, 4 }
 0x1ae   :  { %v538_v9 = vpop.eup %537  ;;  %v311_v16 = vadd.f32 %v310_v11, %v309_v7 }
 0x1af   :  { %v303_v10 = vsel %vm292_vm2, %v538_v9, 0.0  ;;  %v419_v25 = vadd.f32 %v418_v24, %v399_v8 }
 0x1b0   :  { %v317_v12 = vsel %vm304_vm3, %v303_v10, 0.0  ;;  %v312_v19 = vrot.slane %v311_v16, 1 }
 0x1b1   :  { %v318_v14 = vrot.slane %v317_v12, 4  ;;  %274 = vadd.xlane.f32.xlu1 %v273_v13  ;;  %v420_v26 = vrot.slane %v419_v25, 2 }
 0x1b2   :  { %v313_v21 = vadd.f32 %v312_v19, %v311_v16 }
 0x1b3   :  { %v319_v15 = vadd.f32 %v318_v14, %v317_v12  ;;  %v421_v27 = vadd.f32 %v420_v26, %v419_v25 }
 0x1b4   :  { %539 = vlog2.f32 %v313_v21 }
 0x1b5   :  { %v320_v17 = vrot.slane %v319_v15, 2  ;;  %v422_v28 = vrot.slane %v421_v27, 1 }
 0x1b7   :  { %v321_v18 = vadd.f32 %v320_v17, %v319_v15  ;;  %v423_v30 = vadd.f32 %v422_v28, %v421_v27 }
 0x1b9   :  { %v322_v20 = vrot.slane %v321_v18, 1 }
 0x1bb   :  { %v323_v22 = vadd.f32 %v322_v20, %v321_v18 }
 0x1bd   :  { %v376_v23 = vadd.f32 %v323_v22, %v313_v21 }
 0x1bf   :  { %541 = vlog2.f32 %v376_v23 }
 0x1c1   :  { %v540_v36 = vpop.eup %539 }
 0x1c2   :  { %v341_v39 = vmul.f32 0.6931472, %v540_v36 }
 0x1c4   :  { %v343_v42 = vsel %vm342_vm5, %v341_v39, 0.0 }
 0x1cc   :  { %v542_v40 = vpop.eup %541 }
 0x1cd   :  { %v378_v43 = vmul.f32 0.6931472, %v542_v40 }
 0x1cf   :  { %v379_v49 = vsel %vm342_vm5, %v378_v43, 0.0 }
 0x22f   :  { %v316_v29 = vpop.xlane.xlu0 %315 }
 0x231   :  { %v307_v31 = vpop.xlane.xlu1 %306 }
 0x232   :  { %543 = vlog2.f32 %v307_v31  ;;  %v359_v32 = vadd.f32 %v316_v29, %v307_v31 }
 0x233   :  { %v257_v33 = vpop.xlane.xlu0 %256  ;;  %545 = vlog2.f32 %v423_v30 }
 0x234   :  { %547 = vlog2.f32 %v359_v32  ;;  %v259_v34 = vsel %vm258_vm4, %v257_v33, 0.0 }
 0x235   :  { %260 = vadd.xlane.f32.xlu0 %v259_v34 }
 0x236   :  { %v401_v35 = vpop.xlane.xlu1 %400 }
 0x237   :  { %549 = vlog2.f32 %v401_v35 }
 0x23a   :  { %v275_v37 = vpop.xlane.xlu1 %274 }
 0x23b   :  { %v276_v38 = vsel %vm258_vm4, %v275_v37, 0.0 }
 0x23c   :  { %277 = vadd.xlane.f32.xlu1 %v276_v38 }
 0x23f   :  { %v544_v41 = vpop.eup %543 }
 0x240   :  { %v546_v44 = vpop.eup %545  ;;  %344 = vadd.xlane.f32.xlu1 %v343_v42  ;;  %v325_v45 = vmul.f32 0.6931472, %v544_v41 }
 0x241   :  { %v548_v46 = vpop.eup %547  ;;  %v425_v50 = vmul.f32 0.6931472, %v546_v44 }
 0x242   :  { %v326_v47 = vsel %vm258_vm4, %v325_v45, 0.0  ;;  %v361_v48 = vmul.f32 0.6931472, %v548_v46 }
 0x243   :  { %327 = vadd.xlane.f32.xlu0 %v326_v47  ;;  %v426_v54 = vsel %vm342_vm5, %v425_v50, 0.0 }
 0x244   :  { %v550_v51 = vpop.eup %549  ;;  %380 = vadd.xlane.f32.xlu1 %v379_v49  ;;  %v362_v52 = vsel %vm258_vm4, %v361_v48, 0.0 }
 0x245   :  { %v403_v53 = vmul.f32 0.6931472, %v550_v51 }
 0x247   :  { %363 = vadd.xlane.f32.xlu0 %v362_v52  ;;  %v404_v55 = vsel %vm258_vm4, %v403_v53, 0.0 }
 0x248   :  { %427 = vadd.xlane.f32.xlu1 %v426_v54 }
 0x24b   :  { %405 = vadd.xlane.f32.xlu0 %v404_v55 }
 0x2be   :  { %v261_v56 = vpop.xlane.xlu0 %260 }
 0x2bf   :  { %v262_v57 = vrot.slane %v261_v56, 4 }
 0x2c1   :  { %v263_v58 = vadd.f32 %v262_v57, %v261_v56 }
 0x2c3   :  { %v264_v59 = vrot.slane %v263_v58, 2 }
 0x2c5   :  { %v278_v60 = vpop.xlane.xlu1 %277  ;;  %v265_v61 = vadd.f32 %v264_v59, %v263_v58 }
 0x2c6   :  { %v279_v62 = vrot.slane %v278_v60, 4 }
 0x2c7   :  { %v266_v63 = vrot.slane %v265_v61, 1 }
 0x2c8   :  { %v280_v0 = vadd.f32 %v279_v62, %v278_v60 }
 0x2c9   :  { %v345_v1 = vpop.xlane.xlu1 %344  ;;  %v267_v2 = vadd.f32 %v266_v63, %v265_v61 }
 0x2ca   :  { %v281_v3 = vrot.slane %v280_v0, 2  ;;  %v346_v4 = vrot.slane %v345_v1, 4 }
 0x2cb   :  { %503 = vpush %v267_v2 }
 0x2cc   :  { %v347_v5 = vadd.f32 %v346_v4, %v345_v1  ;;  %v328_v6 = vpop.xlane.xlu0 %327  ;;  %v282_v7 = vadd.f32 %v281_v3, %v280_v0 }
 0x2cd   :  { %v381_v8 = vpop.xlane.xlu1 %380  ;;  %v329_v9 = vrot.slane %v328_v6, 4 }
 0x2ce   :  { %v348_v10 = vrot.slane %v347_v5, 2  ;;  %v382_v11 = vrot.slane %v381_v8, 4  ;;  %v283_v12 = vrot.slane %v282_v7, 1 }
 0x2cf   :  { %v330_v13 = vadd.f32 %v329_v9, %v328_v6 }
 0x2d0   :  { %v383_v14 = vadd.f32 %v382_v11, %v381_v8  ;;  %v364_v15 = vpop.xlane.xlu0 %363  ;;  %v284_v16 = vadd.f32 %v283_v12, %v282_v7  ;;  %v349_v17 = vadd.f32 %v348_v10, %v347_v5 }
 0x2d1   :  { %v331_v18 = vrot.slane %v330_v13, 2  ;;  %v428_v19 = vpop.xlane.xlu1 %427  ;;  %v365_v20 = vrot.slane %v364_v15, 4 }
 0x2d2   :  { %v384_v21 = vrot.slane %v383_v14, 2  ;;  %v429_v22 = vrot.slane %v428_v19, 4  ;;  %505 = vpush %v284_v16  ;;  %v350_v27 = vrot.slane %v349_v17, 1 }
 0x2d3   :  { %v366_v23 = vadd.f32 %v365_v20, %v364_v15  ;;  %v332_v24 = vadd.f32 %v331_v18, %v330_v13 }
 0x2d4   :  { %v430_v25 = vadd.f32 %v429_v22, %v428_v19  ;;  %v406_v26 = vpop.xlane.xlu0 %405  ;;  %v385_v28 = vadd.f32 %v384_v21, %v383_v14  ;;  %v351_v37 = vadd.f32 %v350_v27, %v349_v17 }
 0x2d5   :  { %v367_v29 = vrot.slane %v366_v23, 2  ;;  %v407_v30 = vrot.slane %v406_v26, 4  ;;  %v333_v31 = vrot.slane %v332_v24, 1 }
 0x2d6   :  { %v431_v32 = vrot.slane %v430_v25, 2  ;;  %v386_v38 = vrot.slane %v385_v28, 1 }
 0x2d7   :  { %v408_v33 = vadd.f32 %v407_v30, %v406_v26  ;;  %v334_v34 = vadd.f32 %v333_v31, %v332_v24  ;;  %v368_v35 = vadd.f32 %v367_v29, %v366_v23 }
 0x2d8   :  { %v432_v36 = vadd.f32 %v431_v32, %v430_v25  ;;  %v387_v43 = vadd.f32 %v386_v38, %v385_v28 }
 0x2d9   :  { %v409_v39 = vrot.slane %v408_v33, 2  ;;  %507 = vpush %v334_v34  ;;  %v369_v40 = vrot.slane %v368_v35, 1 }
 0x2da   :  { %509 = vpush %v351_v37  ;;  %v433_v44 = vrot.slane %v432_v36, 1 }
 0x2db   :  { %v410_v41 = vadd.f32 %v409_v39, %v408_v33  ;;  %v370_v42 = vadd.f32 %v369_v40, %v368_v35 }
 0x2dc   :  { %v434_v47 = vadd.f32 %v433_v44, %v432_v36 }
 0x2dd   :  { %511 = vpush %v370_v42  ;;  %v411_v45 = vrot.slane %v410_v41, 1 }
 0x2de   :  { %513 = vpush %v387_v43 }
 0x2df   :  { %v412_v46 = vadd.f32 %v411_v45, %v410_v41 }
 0x2e1   :  { %515 = vpush %v412_v46 }
 0x2e2   :  { %517 = vpush %v434_v47 }
 0x2fc   :  { %s504_s0 = spop %503 }
 0x2fd   :  { %v269_v52 = vstv %s504_s0 }
 0x2fe   :  { %v271_v58 = vmul.f32 0.125, %v269_v52 }
 0x303   :  { %s506_s2 = spop %505 }
 0x304   :  { %v286_v60 = vstv %s506_s2 }
 0x305   :  { %v287_v7 = vmul.f32 0.125, %v286_v60 }
 0x30a   :  { %s508_s26 = spop %507 }
 0x30b   :  { %v336_v48 = vstv %s508_s26  ;;  %s510_s27 = spop %509 }
 0x30c   :  { %v337_v49 = vmul.f32 0.125, %v336_v48  ;;  %v353_v50 = vstv %s510_s27 }
 0x30d   :  { %v354_v51 = vmul.f32 0.125, %v353_v50 }
 0x30e   :  { %s512_s28 = spop %511  ;;  %v338_v53 = vadd.f32 10.0, %v337_v49 }
 0x30f   :  { %v355_v54 = vadd.f32 10.0, %v354_v51  ;;  %v372_v55 = vstv %s512_s28  ;;  %s514_s29 = spop %513 }
 0x310   :  { %v373_v56 = vmul.f32 0.125, %v372_v55  ;;  %v389_v57 = vstv %s514_s29  ;;  %v339_v62 = vsub.f32 %v338_v53, %v271_v58 }
 0x311   :  { %v390_v59 = vmul.f32 0.125, %v389_v57  ;;  %v356_v63 = vsub.f32 %v355_v54, %v271_v58 }
 0x312   :  { %v374_v61 = vadd.f32 10.0, %v373_v56  ;;  %s516_s30 = spop %515 }
 0x313   :  { %v391_v0 = vadd.f32 10.0, %v390_v59  ;;  %v414_v1 = vstv %s516_s30  ;;  %s518_s4 = spop %517  ;;  %v357_v10 = vadd.f32 %v356_v63, %v339_v62 }
 0x314   :  { %v375_v2 = vsub.f32 %v374_v61, %v271_v58  ;;  %v415_v3 = vmul.f32 0.125, %v414_v1  ;;  %v436_v4 = vstv %s518_s4 }
 0x315   :  { %v392_v5 = vsub.f32 %v391_v0, %v271_v58  ;;  %v437_v6 = vmul.f32 0.125, %v436_v4  ;;  %v358_v16 = vmul.f32 0.5, %v357_v10 }
 0x316   :  { %v393_v8 = vmul.f32 0.75, %v375_v2  ;;  %v416_v9 = vadd.f32 10.0, %v415_v3 }
 0x317   :  { %v394_v11 = vmul.f32 0.25, %v392_v5  ;;  %v438_v12 = vadd.f32 10.0, %v437_v6 }
 0x318   :  { %v417_v13 = vsub.f32 %v416_v9, %v287_v7 }
 0x319   :  { %v395_v14 = vadd.f32 %v394_v11, %v393_v8  ;;  %v439_v15 = vsub.f32 %v438_v12, %v287_v7 }
 0x31b   :  { %v440_v17 = vadd.f32 %v439_v15, %v417_v13  ;;  %v442_v18 = vadd.f32 %v395_v14, %v358_v16 }
 0x31d   :  { %v441_v19 = vmul.f32 0.5, %v440_v17 }
 0x31f   :  { %v443_v20 = vadd.f32 %v442_v18, %v441_v19 }
 0x321   :  { %v444_v21 = vmul.f32 0.33333334, %v443_v20 }
 0x323   :  { %446 = vst.msk [vmem:[#allocation8] sm:$0x1] %vm445_vm6, %v444_v21 }
 0x324   :  { %622 = shalt.err (!%p619_p5)
}
 0x325   :  { %456 = dma.vmem_to_hbm [thread:$0]  %s454_s6, 16, %s711_s3, [#allocation4]  }
 0x326   :  { %635 = dma.done.wait [#allocation4], 16  }
 0x327   :  { %636 = vsyncadd [#allocation4], 4294967280 }
 0x328   :  { %460 = vsyncpa [#allocation3], 1 }
 0x329   :  { %461 = vsyncpa [#allocation6], 1 }
 0x32a   :  { %462 = vsyncpa [#allocation4], 1 }

</bundles_post_ra>
